<compile_context>
chip_gen: v6e
topology: v6e:2x2x1
jax: 0.10.0
libtpu: 0.0.40
codegen_flags: <defaults>
</compile_context>

<pallas_src>
import jax
import jax.numpy as jnp
from jax.experimental import pallas as pl
from jax.experimental.pallas import tpu as pltpu


def model_kernel(x_ref, p_ref, out_ref):
    # x_ref: (1, 2, 2) f32   p_ref: (56, 2) f32 slab   out_ref: (2, 1, 1, 2) f32
    x = x_ref[0]                         # (2, 2) : x[c, l] = x1[0, c, l]   [R3]

    # ---- sublane-8-aligned parameter group loads (one tile each)  [R5] ----
    gL  = p_ref[0:8,   :]    # linear : rows 0-1 wl[:,l] (== wl.T rows), row 2 bl
    gC1 = p_ref[8:16,  :]    # conv1  : rows 0-1 wc1[:,a] (== wc1.T rows), row 2 bc1
    gL2 = p_ref[16:24, :]    # linear2: rows 0-1 wl2[:,l], row 2 bl2
    gC2 = p_ref[24:32, :]    # conv2  : rows 0-1 wc2 (as stored), rows 2-3 col0 = bc2
    gL3 = p_ref[32:40, :]    # linear3: rows 0-1 col0 = wl3[0,:2], row 2 col0 = bl3
    gC3 = p_ref[40:48, :]    # conv3  : rows 0-1 col0 = wc3[:,0], rows 2-3 col0 = bc3
    gL1 = p_ref[48:56, :]    # linear1: row 0 = wl1[:,0], row 1 = bl1

    # v4 = linear(x):  v4[c, j] = x[c,0]*wl[j,0] + x[c,1]*wl[j,1] + bl[j]
    v4 = x[:, 0:1] * gL[0:1, :] + x[:, 1:2] * gL[1:2, :] + gL[2:3, :]        # (2,2)
    # y1 = permuted(v4) * permuted(x) == (v4 * x) transposed; keep untransposed.
    z = v4 * x                                                               # (2,2)
    # conv1 (1x1 channel mix): t[b,i] = z[b,0]*wc1[i,0] + z[b,1]*wc1[i,1] + bc1[i]
    t = z[:, 0:1] * gC1[0:1, :] + z[:, 1:2] * gC1[1:2, :] + gC1[2:3, :]      # (2,2)
    # y4 = tanh(max over last conv dim): explicit pairwise max (no XLU reduce)
    y4 = jnp.tanh(jnp.maximum(t[0:1, :], t[1:2, :]))                         # (1,2)
    # v6 = linear2(y4)
    v6 = y4[:, 0:1] * gL2[0:1, :] + y4[:, 1:2] * gL2[1:2, :] + gL2[2:3, :]   # (1,2)
    v7 = y4 * v6                                                             # (1,2)
    # (v8 = sigmoid(v7) is dead code in the reference.)
    # conv2 (1x1 channel mix) on v7.T: y7[i] = wc2[i,0]*v7[0] + wc2[i,1]*v7[1] + bc2[i]
    wc2 = gC2[0:2, :]
    y7 = v7[:, 0:1] * wc2[:, 0:1] + v7[:, 1:2] * wc2[:, 1:2] + gC2[2:4, 0:1] # (2,1)
    # y10 = -(-relu(93.305 - sigmoid(y7))): double negation folded AND the relu
    # is provably a no-op (argument always in (92.3, 93.3)).             [R6]
    y10 = 93.305 - jax.nn.sigmoid(y7)                                        # (2,1)
    # linear3 (repaired to 2 in-features): y11 = y10[0]*wl3[0,0] + y10[1]*wl3[0,1] + bl3
    prod = y10 * gL3[0:2, 0:1]                                               # (2,1)
    y11 = prod[0:1, :] + prod[1:2, :] + gL3[2:3, 0:1]                        # (1,1)
    y13 = jnp.maximum(3.0 * y11, 0.0)                                        # relu(3*y11)
    # conv3 (repaired to 1 in-channel): y14[i] = wc3[i,0]*y13 + bc3[i]
    y14 = y13 * gC3[0:2, 0:1] + gC3[2:4, 0:1]                                # (2,1)
    y16 = jax.nn.sigmoid(y14)                          # flatten(1): no-op
    # [R2] y16 in (0,1) => tanh saturates to -1 in f32 and y23 == -18.953;
    # kept as written (fully hidden under launch overhead, see header).
    y23 = 10.57 + 29.523 * jnp.tanh(3.0 * (y16 - 66.767))                    # (2,1)
    # linear1 (repaired to 1 in-feature): y24[i,j] = y23[i]*wl1[j,0] + bl1[j]
    y24 = y23 * gL1[0:1, :] + gL1[1:2, :]                                    # (2,2)
    y26 = jax.nn.sigmoid(y24) - 53.611
    res = jax.nn.sigmoid(2.477 * y26)                                        # (2,2)

    # Write the 4-D output directly (no wrapper-side reshape).  [R3]
    out_ref[0:1, 0:1, 0:1, :] = res[0:1, :].reshape(1, 1, 1, 2)
    out_ref[1:2, 0:1, 0:1, :] = res[1:2, :].reshape(1, 1, 1, 2)


def init_params(key):
    ks = jax.random.split(key, 14)
    u = lambda k, shape, b: jax.random.uniform(k, shape, jnp.float32, -b, b)
    return {
        "wl":  u(ks[0],  (2, 2), 0.7), "bl":  u(ks[1],  (2,), 0.7),   # Linear(2,2)
        "wl1": u(ks[2],  (2, 2), 0.7), "bl1": u(ks[3],  (2,), 0.7),   # Linear(2,2)
        "wl2": u(ks[4],  (2, 2), 0.7), "bl2": u(ks[5],  (2,), 0.7),   # Linear(2,2)
        "wl3": u(ks[6],  (1, 3), 0.6), "bl3": u(ks[7],  (1,), 0.6),   # Linear(3,1)
        "wc1": u(ks[8],  (2, 2), 0.7), "bc1": u(ks[9],  (2,), 0.7),   # Conv2d(2,2,1x1) squeezed
        "wc2": u(ks[10], (2, 2), 0.7), "bc2": u(ks[11], (2,), 0.7),
        "wc3": u(ks[12], (2, 2), 0.7), "bc3": u(ks[13], (2,), 0.7),
    }


def pack_params(p):
    """One-time host-side packing into a (56, 2) f32 slab.

    Each logical parameter group owns its own 8-row tile so every in-kernel
    ref slice starts at a sublane-multiple-of-8 row offset.  [R5]
    """
    f32 = jnp.float32
    z2 = jnp.zeros((2,), f32)
    z1 = jnp.zeros((1,), f32)

    def lane0(v):                       # length-1 vector -> lane 0, pad lane 1
        return jnp.concatenate([v.astype(f32).reshape(1), z1])

    pad5 = [z2] * 5
    pad4 = [z2] * 4
    rows = (
        # group 0 (rows 0-7):  linear   -- wl.T rows, bias row
        [p["wl"][:, 0], p["wl"][:, 1], p["bl"]] + pad5 +
        # group 1 (rows 8-15): conv1    -- wc1.T rows, bias row
        [p["wc1"][:, 0], p["wc1"][:, 1], p["bc1"]] + pad5 +
        # group 2 (rows 16-23): linear2 -- wl2.T rows, bias row
        [p["wl2"][:, 0], p["wl2"][:, 1], p["bl2"]] + pad5 +
        # group 3 (rows 24-31): conv2   -- wc2 rows as stored, bias as lane-0 column
        [p["wc2"][0], p["wc2"][1], lane0(p["bc2"][0:1]), lane0(p["bc2"][1:2])] + pad4 +
        # group 4 (rows 32-39): linear3 -- wl3[0,:2] + bias as lane-0 column (repair)
        [lane0(p["wl3"][0, 0:1]), lane0(p["wl3"][0, 1:2]), lane0(p["bl3"][0:1])] + pad5 +
        # group 5 (rows 40-47): conv3   -- wc3[:,0] + bias as lane-0 column (repair)
        [lane0(p["wc3"][0, 0:1]), lane0(p["wc3"][1, 0:1]),
         lane0(p["bc3"][0:1]), lane0(p["bc3"][1:2])] + pad4 +
        # group 6 (rows 48-55): linear1 -- wl1[:,0] row (repair), bias row
        [p["wl1"][:, 0], p["bl1"]] + [z2] * 6
    )
    return jnp.stack(rows).astype(f32)          # (56, 2)


def repaired_reference(x1, p):
    """Pure-JAX implementation of the same repaired graph (semantic lock)."""
    x = x1[0]                                               # (2, 2)
    v4 = x @ p["wl"].T + p["bl"]                            # linear          (2,2)
    z = v4 * x                                              # y1, untransposed
    t = z @ p["wc1"].T + p["bc1"]                           # conv1 channel mix (== y3.T)
    y4 = jnp.tanh(jnp.max(t, axis=0, keepdims=True))        # (1,2)
    v6 = y4 @ p["wl2"].T + p["bl2"]                         # linear2         (1,2)
    v7 = y4 * v6                                            # (1,2)
    y7 = p["wc2"] @ v7.T + p["bc2"][:, None]                # conv2           (2,1)
    y8 = jax.nn.sigmoid(y7)
    y10 = -(-jax.nn.relu(93.305 - y8))                      # (2,1)
    wl3c = p["wl3"][0, :2][:, None]                         # repaired linear3
    y11 = jnp.sum(y10 * wl3c, axis=0, keepdims=True) + p["bl3"][:, None]   # (1,1)
    y13 = jax.nn.relu(3.0 * y11)
    y14 = y13 * p["wc3"][:, 0:1] + p["bc3"][:, None]        # repaired conv3  (2,1)
    y16 = jax.nn.sigmoid(y14)
    y23 = 10.57 + 29.523 * jnp.tanh(3.0 * (y16 - 66.767))   # (2,1)
    y24 = y23 @ p["wl1"][:, 0:1].T + p["bl1"]               # repaired linear1 (2,2)
    y26 = jax.nn.sigmoid(y24) - 53.611
    return jax.nn.sigmoid(2.477 * y26).reshape(2, 1, 1, 2)


@jax.jit
def model_forward(x1, packed_params):
    # The jitted wrapper is ONLY the custom call: no pre-slice, no post-reshape. [R3]
    return pl.pallas_call(
        model_kernel,
        out_shape=jax.ShapeDtypeStruct((2, 1, 1, 2), jnp.float32),
        in_specs=[pl.BlockSpec(memory_space=pltpu.MemorySpace.VMEM),
                  pl.BlockSpec(memory_space=pltpu.MemorySpace.VMEM)],
        out_specs=pl.BlockSpec(memory_space=pltpu.MemorySpace.VMEM),
    )(x1, packed_params)


if __name__ == "__main__":
    key = jax.random.PRNGKey(0)
    k_x, k_p = jax.random.split(key)
    x1 = jax.random.normal(k_x, (1, 2, 2), jnp.float32)
    params = init_params(k_p)
    packed = pack_params(params)              # one-time host-side packing -> 1 param DMA
    out = model_forward(x1, packed)
    jax.block_until_ready(out)
    assert out.shape == (2, 1, 1, 2) and out.dtype == jnp.float32
    # Semantic lock (review correctness concern): compare against a pure-JAX
    # implementation of the same repaired graph (in f32 the output saturates
    # to a constant; this check validates that rather than hard-coding it).
    ref = repaired_reference(x1, params)
    assert bool(jnp.allclose(out, ref, atol=1e-5, rtol=1e-5))
    print("KERNEL_OK")
</pallas_src>

<mosaic_0001>
module attributes {stable_mosaic.version = 11 : i64} {
  func.func @model_kernel(%arg0: memref<1x2x2xf32, #tpu.memory_space<vmem>>, %arg1: memref<56x2xf32, #tpu.memory_space<vmem>>, %arg2: memref<2x1x1x2xf32, #tpu.memory_space<vmem>>) attributes {dimension_semantics = [], scalar_prefetch = 0 : i64, scratch_operands = 0 : i64, tpu.core_type = #tpu.core_type<tc>} {
    %c0 = arith.constant 0 : index
    %c0_0 = arith.constant 0 : index
    %c0_1 = arith.constant 0 : index
    %0 = vector.load %arg0[%c0, %c0_0, %c0_1] : memref<1x2x2xf32, #tpu.memory_space<vmem>>, vector<1x2x2xf32>
    %1 = vector.shape_cast %0 : vector<1x2x2xf32> to vector<2x2xf32>
    %c0_2 = arith.constant 0 : index
    %c0_3 = arith.constant 0 : index
    %2 = vector.load %arg1[%c0_2, %c0_3] : memref<56x2xf32, #tpu.memory_space<vmem>>, vector<8x2xf32>
    %c8 = arith.constant 8 : index
    %c0_4 = arith.constant 0 : index
    %3 = vector.load %arg1[%c8, %c0_4] : memref<56x2xf32, #tpu.memory_space<vmem>>, vector<8x2xf32>
    %c16 = arith.constant 16 : index
    %c0_5 = arith.constant 0 : index
    %4 = vector.load %arg1[%c16, %c0_5] : memref<56x2xf32, #tpu.memory_space<vmem>>, vector<8x2xf32>
    %c24 = arith.constant 24 : index
    %c0_6 = arith.constant 0 : index
    %5 = vector.load %arg1[%c24, %c0_6] : memref<56x2xf32, #tpu.memory_space<vmem>>, vector<8x2xf32>
    %c32 = arith.constant 32 : index
    %c0_7 = arith.constant 0 : index
    %6 = vector.load %arg1[%c32, %c0_7] : memref<56x2xf32, #tpu.memory_space<vmem>>, vector<8x2xf32>
    %c40 = arith.constant 40 : index
    %c0_8 = arith.constant 0 : index
    %7 = vector.load %arg1[%c40, %c0_8] : memref<56x2xf32, #tpu.memory_space<vmem>>, vector<8x2xf32>
    %c48 = arith.constant 48 : index
    %c0_9 = arith.constant 0 : index
    %8 = vector.load %arg1[%c48, %c0_9] : memref<56x2xf32, #tpu.memory_space<vmem>>, vector<8x2xf32>
    %9 = vector.extract_strided_slice %1 {offsets = [0, 0], sizes = [2, 1], strides = [1, 1]} : vector<2x2xf32> to vector<2x1xf32>
    %10 = vector.extract_strided_slice %2 {offsets = [0, 0], sizes = [1, 2], strides = [1, 1]} : vector<8x2xf32> to vector<1x2xf32>
    %11 = vector.broadcast %9 : vector<2x1xf32> to vector<2x2xf32>
    %12 = vector.broadcast %10 : vector<1x2xf32> to vector<2x2xf32>
    %13 = arith.mulf %11, %12 : vector<2x2xf32>
    %14 = vector.extract_strided_slice %1 {offsets = [0, 1], sizes = [2, 1], strides = [1, 1]} : vector<2x2xf32> to vector<2x1xf32>
    %15 = vector.extract_strided_slice %2 {offsets = [1, 0], sizes = [1, 2], strides = [1, 1]} : vector<8x2xf32> to vector<1x2xf32>
    %16 = vector.broadcast %14 : vector<2x1xf32> to vector<2x2xf32>
    %17 = vector.broadcast %15 : vector<1x2xf32> to vector<2x2xf32>
    %18 = arith.mulf %16, %17 : vector<2x2xf32>
    %19 = arith.addf %13, %18 : vector<2x2xf32>
    %20 = vector.extract_strided_slice %2 {offsets = [2, 0], sizes = [1, 2], strides = [1, 1]} : vector<8x2xf32> to vector<1x2xf32>
    %21 = vector.broadcast %20 : vector<1x2xf32> to vector<2x2xf32>
    %22 = arith.addf %19, %21 : vector<2x2xf32>
    %23 = arith.mulf %22, %1 : vector<2x2xf32>
    %24 = vector.extract_strided_slice %23 {offsets = [0, 0], sizes = [2, 1], strides = [1, 1]} : vector<2x2xf32> to vector<2x1xf32>
    %25 = vector.extract_strided_slice %3 {offsets = [0, 0], sizes = [1, 2], strides = [1, 1]} : vector<8x2xf32> to vector<1x2xf32>
    %26 = vector.broadcast %24 : vector<2x1xf32> to vector<2x2xf32>
    %27 = vector.broadcast %25 : vector<1x2xf32> to vector<2x2xf32>
    %28 = arith.mulf %26, %27 : vector<2x2xf32>
    %29 = vector.extract_strided_slice %23 {offsets = [0, 1], sizes = [2, 1], strides = [1, 1]} : vector<2x2xf32> to vector<2x1xf32>
    %30 = vector.extract_strided_slice %3 {offsets = [1, 0], sizes = [1, 2], strides = [1, 1]} : vector<8x2xf32> to vector<1x2xf32>
    %31 = vector.broadcast %29 : vector<2x1xf32> to vector<2x2xf32>
    %32 = vector.broadcast %30 : vector<1x2xf32> to vector<2x2xf32>
    %33 = arith.mulf %31, %32 : vector<2x2xf32>
    %34 = arith.addf %28, %33 : vector<2x2xf32>
    %35 = vector.extract_strided_slice %3 {offsets = [2, 0], sizes = [1, 2], strides = [1, 1]} : vector<8x2xf32> to vector<1x2xf32>
    %36 = vector.broadcast %35 : vector<1x2xf32> to vector<2x2xf32>
    %37 = arith.addf %34, %36 : vector<2x2xf32>
    %38 = vector.extract_strided_slice %37 {offsets = [0, 0], sizes = [1, 2], strides = [1, 1]} : vector<2x2xf32> to vector<1x2xf32>
    %39 = vector.extract_strided_slice %37 {offsets = [1, 0], sizes = [1, 2], strides = [1, 1]} : vector<2x2xf32> to vector<1x2xf32>
    %40 = arith.maximumf %38, %39 : vector<1x2xf32>
    %41 = math.tanh %40 : vector<1x2xf32>
    %42 = vector.extract_strided_slice %41 {offsets = [0, 0], sizes = [1, 1], strides = [1, 1]} : vector<1x2xf32> to vector<1x1xf32>
    %43 = vector.extract_strided_slice %4 {offsets = [0, 0], sizes = [1, 2], strides = [1, 1]} : vector<8x2xf32> to vector<1x2xf32>
    %44 = vector.broadcast %42 : vector<1x1xf32> to vector<1x2xf32>
    %45 = arith.mulf %44, %43 : vector<1x2xf32>
    %46 = vector.extract_strided_slice %41 {offsets = [0, 1], sizes = [1, 1], strides = [1, 1]} : vector<1x2xf32> to vector<1x1xf32>
    %47 = vector.extract_strided_slice %4 {offsets = [1, 0], sizes = [1, 2], strides = [1, 1]} : vector<8x2xf32> to vector<1x2xf32>
    %48 = vector.broadcast %46 : vector<1x1xf32> to vector<1x2xf32>
    %49 = arith.mulf %48, %47 : vector<1x2xf32>
    %50 = arith.addf %45, %49 : vector<1x2xf32>
    %51 = vector.extract_strided_slice %4 {offsets = [2, 0], sizes = [1, 2], strides = [1, 1]} : vector<8x2xf32> to vector<1x2xf32>
    %52 = arith.addf %50, %51 : vector<1x2xf32>
    %53 = arith.mulf %41, %52 : vector<1x2xf32>
    %54 = vector.extract_strided_slice %5 {offsets = [0, 0], sizes = [2, 2], strides = [1, 1]} : vector<8x2xf32> to vector<2x2xf32>
    %55 = vector.extract_strided_slice %53 {offsets = [0, 0], sizes = [1, 1], strides = [1, 1]} : vector<1x2xf32> to vector<1x1xf32>
    %56 = vector.extract_strided_slice %54 {offsets = [0, 0], sizes = [2, 1], strides = [1, 1]} : vector<2x2xf32> to vector<2x1xf32>
    %57 = vector.broadcast %55 : vector<1x1xf32> to vector<2x1xf32>
    %58 = arith.mulf %57, %56 : vector<2x1xf32>
    %59 = vector.extract_strided_slice %53 {offsets = [0, 1], sizes = [1, 1], strides = [1, 1]} : vector<1x2xf32> to vector<1x1xf32>
    %60 = vector.extract_strided_slice %54 {offsets = [0, 1], sizes = [2, 1], strides = [1, 1]} : vector<2x2xf32> to vector<2x1xf32>
    %61 = vector.broadcast %59 : vector<1x1xf32> to vector<2x1xf32>
    %62 = arith.mulf %61, %60 : vector<2x1xf32>
    %63 = arith.addf %58, %62 : vector<2x1xf32>
    %64 = vector.extract_strided_slice %5 {offsets = [2, 0], sizes = [2, 1], strides = [1, 1]} : vector<8x2xf32> to vector<2x1xf32>
    %65 = arith.addf %63, %64 : vector<2x1xf32>
    %66 = arith.negf %65 : vector<2x1xf32>
    %67 = math.exp %66 : vector<2x1xf32>
    %cst = arith.constant 1.000000e+00 : f32
    %68 = vector.broadcast %cst : f32 to vector<2x1xf32>
    %69 = arith.addf %68, %67 : vector<2x1xf32>
    %70 = arith.divf %68, %69 : vector<2x1xf32>
    %cst_10 = arith.constant 9.330500e+01 : f32
    %71 = vector.broadcast %cst_10 : f32 to vector<2x1xf32>
    %72 = arith.subf %71, %70 : vector<2x1xf32>
    %73 = vector.extract_strided_slice %6 {offsets = [0, 0], sizes = [2, 1], strides = [1, 1]} : vector<8x2xf32> to vector<2x1xf32>
    %74 = arith.mulf %72, %73 : vector<2x1xf32>
    %75 = vector.extract_strided_slice %74 {offsets = [0, 0], sizes = [1, 1], strides = [1, 1]} : vector<2x1xf32> to vector<1x1xf32>
    %76 = vector.extract_strided_slice %74 {offsets = [1, 0], sizes = [1, 1], strides = [1, 1]} : vector<2x1xf32> to vector<1x1xf32>
    %77 = arith.addf %75, %76 : vector<1x1xf32>
    %78 = vector.extract_strided_slice %6 {offsets = [2, 0], sizes = [1, 1], strides = [1, 1]} : vector<8x2xf32> to vector<1x1xf32>
    %79 = arith.addf %77, %78 : vector<1x1xf32>
    %cst_11 = arith.constant 3.000000e+00 : f32
    %80 = vector.broadcast %cst_11 : f32 to vector<1x1xf32>
    %81 = arith.mulf %80, %79 : vector<1x1xf32>
    %cst_12 = arith.constant 0.000000e+00 : f32
    %82 = vector.broadcast %cst_12 : f32 to vector<1x1xf32>
    %83 = arith.maximumf %81, %82 : vector<1x1xf32>
    %84 = vector.extract_strided_slice %7 {offsets = [0, 0], sizes = [2, 1], strides = [1, 1]} : vector<8x2xf32> to vector<2x1xf32>
    %85 = vector.broadcast %83 : vector<1x1xf32> to vector<2x1xf32>
    %86 = arith.mulf %85, %84 : vector<2x1xf32>
    %87 = vector.extract_strided_slice %7 {offsets = [2, 0], sizes = [2, 1], strides = [1, 1]} : vector<8x2xf32> to vector<2x1xf32>
    %88 = arith.addf %86, %87 : vector<2x1xf32>
    %89 = arith.negf %88 : vector<2x1xf32>
    %90 = math.exp %89 : vector<2x1xf32>
    %cst_13 = arith.constant 1.000000e+00 : f32
    %91 = vector.broadcast %cst_13 : f32 to vector<2x1xf32>
    %92 = arith.addf %91, %90 : vector<2x1xf32>
    %93 = arith.divf %91, %92 : vector<2x1xf32>
    %cst_14 = arith.constant 6.676700e+01 : f32
    %94 = vector.broadcast %cst_14 : f32 to vector<2x1xf32>
    %95 = arith.subf %93, %94 : vector<2x1xf32>
    %cst_15 = arith.constant 3.000000e+00 : f32
    %96 = vector.broadcast %cst_15 : f32 to vector<2x1xf32>
    %97 = arith.mulf %96, %95 : vector<2x1xf32>
    %98 = math.tanh %97 : vector<2x1xf32>
    %cst_16 = arith.constant 2.952300e+01 : f32
    %99 = vector.broadcast %cst_16 : f32 to vector<2x1xf32>
    %100 = arith.mulf %99, %98 : vector<2x1xf32>
    %cst_17 = arith.constant 1.057000e+01 : f32
    %101 = vector.broadcast %cst_17 : f32 to vector<2x1xf32>
    %102 = arith.addf %101, %100 : vector<2x1xf32>
    %103 = vector.extract_strided_slice %8 {offsets = [0, 0], sizes = [1, 2], strides = [1, 1]} : vector<8x2xf32> to vector<1x2xf32>
    %104 = vector.broadcast %102 : vector<2x1xf32> to vector<2x2xf32>
    %105 = vector.broadcast %103 : vector<1x2xf32> to vector<2x2xf32>
    %106 = arith.mulf %104, %105 : vector<2x2xf32>
    %107 = vector.extract_strided_slice %8 {offsets = [1, 0], sizes = [1, 2], strides = [1, 1]} : vector<8x2xf32> to vector<1x2xf32>
    %108 = vector.broadcast %107 : vector<1x2xf32> to vector<2x2xf32>
    %109 = arith.addf %106, %108 : vector<2x2xf32>
    %110 = arith.negf %109 : vector<2x2xf32>
    %111 = math.exp %110 : vector<2x2xf32>
    %cst_18 = arith.constant 1.000000e+00 : f32
    %112 = vector.broadcast %cst_18 : f32 to vector<2x2xf32>
    %113 = arith.addf %112, %111 : vector<2x2xf32>
    %114 = arith.divf %112, %113 : vector<2x2xf32>
    %cst_19 = arith.constant 5.361100e+01 : f32
    %115 = vector.broadcast %cst_19 : f32 to vector<2x2xf32>
    %116 = arith.subf %114, %115 : vector<2x2xf32>
    %cst_20 = arith.constant 2.477000e+00 : f32
    %117 = vector.broadcast %cst_20 : f32 to vector<2x2xf32>
    %118 = arith.mulf %117, %116 : vector<2x2xf32>
    %119 = arith.negf %118 : vector<2x2xf32>
    %120 = math.exp %119 : vector<2x2xf32>
    %cst_21 = arith.constant 1.000000e+00 : f32
    %121 = vector.broadcast %cst_21 : f32 to vector<2x2xf32>
    %122 = arith.addf %121, %120 : vector<2x2xf32>
    %123 = arith.divf %121, %122 : vector<2x2xf32>
    %124 = vector.extract_strided_slice %123 {offsets = [0, 0], sizes = [1, 2], strides = [1, 1]} : vector<2x2xf32> to vector<1x2xf32>
    %125 = vector.shape_cast %124 : vector<1x2xf32> to vector<1x1x1x2xf32>
    %c0_22 = arith.constant 0 : index
    %c0_23 = arith.constant 0 : index
    %c0_24 = arith.constant 0 : index
    %c0_25 = arith.constant 0 : index
    %126 = vector.load %arg2[%c0_22, %c0_23, %c0_24, %c0_25] : memref<2x1x1x2xf32, #tpu.memory_space<vmem>>, vector<1x1x1x2xf32>
    tpu.vector_store %arg2[%c0_22, %c0_23, %c0_24, %c0_25], %125 {strides = array<i32>} : memref<2x1x1x2xf32, #tpu.memory_space<vmem>>, vector<1x1x1x2xf32>,
    %127 = vector.extract_strided_slice %123 {offsets = [1, 0], sizes = [1, 2], strides = [1, 1]} : vector<2x2xf32> to vector<1x2xf32>
    %128 = vector.shape_cast %127 : vector<1x2xf32> to vector<1x1x1x2xf32>
    %c1 = arith.constant 1 : index
    %c0_26 = arith.constant 0 : index
    %c0_27 = arith.constant 0 : index
    %c0_28 = arith.constant 0 : index
    %129 = vector.load %arg2[%c1, %c0_26, %c0_27, %c0_28] : memref<2x1x1x2xf32, #tpu.memory_space<vmem>>, vector<1x1x1x2xf32>
    tpu.vector_store %arg2[%c1, %c0_26, %c0_27, %c0_28], %128 {strides = array<i32>} : memref<2x1x1x2xf32, #tpu.memory_space<vmem>>, vector<1x1x1x2xf32>,
    return
  }
}

</mosaic_0001>

<bundles_post_ra>
// kernel: model_forward.1
= control target key start
LH: loop header
LB: loop body
LE: loop exit
PB: predicated region body
PF: predicated region fallthrough
CT: control target
= control target key end

     0   :  { %v257_v1 = vmov 0   ;;  %s317_s0 = inlined_call_operand.vmem [shape: f32[1,2,2], index: 0, kind: input, shape index: {}]   ;;  %s318_s1 = inlined_call_operand.vmem [shape: f32[56,2], index: 1, kind: input, shape index: {}]   ;;  %s319_s2 = inlined_call_operand.hbm [shape: f32[2,1,1,2], index: 2, kind: output, shape index: {}]  }
   0x1   :  { %v12_v0 = vld [vmem:[%s317_s0] sm:$0x3]  ;;  %209 = vset.pattern.permute.xlu0 %v257_v1  ;;  %211 = vset.pattern.permute.xlu1 %v257_v1 }
   0x2   :  { %7 = vsyncpa [#allocation3], 0  ;;  %22 = vperm.xlu0 %209, %v12_v0   ;;  %v258_v2 = vmov 1   ;;  %v25_v3 = vlaneseq  ;;  %v13_v7 = vld [vmem:[%s318_s1] sm:$0xff]  ;;  %v14_v19 = vld [vmem:[%s318_s1 + $0x8] sm:$0xff]  ;;  %s259_s18 = smov 127  }
   0x3   :  { %v15_v32 = vld [vmem:[%s318_s1 + $0x10] sm:$0xff]  ;;  %v16_v42 = vld [vmem:[%s318_s1 + $0x18] sm:$0xff]  ;;  %v17_v53 = vld [vmem:[%s318_s1 + $0x20] sm:$0xff]  ;;  %vm176_vm0 = vcmask 8192   ;;  %vm179_vm1 = vcmask 9217  }
   0x4   :  { %v26_v4 = vshrl.u32 %v25_v3, 7  ;;  %v87_v33 = vrot.slane %v15_v32, 1  ;;  %v91_v37 = vrot.slane %v15_v32, 2  ;;  %v106_v45 = vrot.slane %v16_v42, 2  ;;  %v18_v61 = vld [vmem:[%s318_s1 + $0x28] sm:$0xff] }
   0x5   :  { %v122_v56 = vrot.slane %v17_v53, 2 }
   0x6   :  { %210 = vset.pattern.permute.xlu0 %v258_v2  ;;  %v281_v5 = vsub.s32 0, %v26_v4  ;;  %v283_v6 = vsub.s32 1, %v26_v4  ;;  %v42_v11 = vsub.s32 2, %v26_v4 }
   0x7   :  { %31 = vperm.xlu0 %210, %v12_v0  }
   0x8   :  { %v28_v9 = vrot.slane %v13_v7, %v281_v5  ;;  %v37_v10 = vrot.slane %v13_v7, %v283_v6  ;;  %v43_v15 = vrot.slane %v13_v7, %v42_v11  ;;  %v54_v21 = vrot.slane %v14_v19, %v281_v5 }
   0x9   :  { %v63_v22 = vrot.slane %v14_v19, %v283_v6  ;;  %v69_v25 = vrot.slane %v14_v19, %v42_v11 }
  0x7d   :  { %v23_v8 = vpop.permute.xlu0 %22 }
  0x7e   :  { %v29_v13 = vmul.f32 %v28_v9, %v23_v8 }
  0x82   :  { %v32_v12 = vpop.permute.xlu0 %31 }
  0x83   :  { %v38_v14 = vmul.f32 %v37_v10, %v32_v12 }
  0x85   :  { %v39_v16 = vadd.f32 %v38_v14, %v29_v13  ;;  %v19_v14 = vld [vmem:[%s318_s1 + $0x30] sm:$0xff]  ;;  %s260_s1 = smov [#allocation2]  }
  0x86   :  { %s186_s25 = sshll.u32 %s260_s1, 4  ;;  %s187_s25 = int_to_ptr.vmem [resolvable:$true] %s186_s25 }
  0x87   :  { %v44_v17 = vadd.f32 %v43_v15, %v39_v16  ;;  %v155_v15 = vrot.slane %v19_v14, %v281_v5  ;;  %v160_v16 = vrot.slane %v19_v14, %v283_v6  ;;  %s235_s26 = scalar_lea.vmem %s187_s25, 32  ;;  %p240_p1 = scmp.lt.s32.totalorder %s187_s25, %s187_s25 }
  0x88   :  { %p236_p0 = scmp.ne.s32.totalorder %s187_s25, %s235_s26  ;;  %p241_p2 = scmp.lt.s32.totalorder %s235_s26, %s235_s26 }
  0x89   :  { %v45_v18 = vmul.f32 %v44_v17, %v12_v0  ;;  %v133_v0 = vrot.slane %v18_v61, 2 }
  0x8a   :  { %p242_p3 = por %p241_p2, %p240_p1 }
  0x8b   :  { %48 = vperm.xlu1 %211, %v45_v18  }
  0x8c   :  { %p243_p4 = pnand %p242_p3, %p236_p0 }
  0x8f   :  { %212 = vset.pattern.permute.xlu1 %v258_v2 }
  0x90   :  { %57 = vperm.xlu1 %212, %v45_v18  }
  0x94   :  { %213 = vset.pattern.permute.xlu1 %v257_v1 }
 0x106   :  { %v49_v20 = vpop.permute.xlu1 %48 }
 0x107   :  { %v55_v24 = vmul.f32 %v54_v21, %v49_v20 }
 0x10b   :  { %v58_v23 = vpop.permute.xlu1 %57 }
 0x10c   :  { %v64_v26 = vmul.f32 %v63_v22, %v58_v23 }
 0x10e   :  { %v65_v27 = vadd.f32 %v64_v26, %v55_v24 }
 0x110   :  { %v70_v28 = vadd.f32 %v69_v25, %v65_v27 }
 0x112   :  { %v72_v29 = vrot.slane %v70_v28, 1 }
 0x114   :  { %v74_v30 = vmax.f32 %v70_v28, %v72_v29 }
 0x116   :  { %215 = vtanh.f32 %v74_v30 }
 0x123   :  { %v216_v31 = vpop.eup %215 }
 0x124   :  { %83 = vperm.xlu0 %210, %v216_v31   ;;  %78 = vperm.xlu1 %213, %v216_v31  }
 0x128   :  { %214 = vset.pattern.permute.xlu0 %v257_v1 }
 0x19f   :  { %v84_v34 = vpop.permute.xlu0 %83  ;;  %v79_v35 = vpop.permute.xlu1 %78 }
 0x1a0   :  { %v89_v36 = vmul.f32 %v87_v33, %v84_v34  ;;  %v81_v38 = vmul.f32 %v79_v35, %v15_v32 }
 0x1a2   :  { %v90_v39 = vadd.f32 %v89_v36, %v81_v38 }
 0x1a4   :  { %v93_v40 = vadd.f32 %v91_v37, %v90_v39 }
 0x1a6   :  { %v94_v41 = vmul.f32 %v216_v31, %v93_v40 }
 0x1a8   :  { %v98_v43 = vrot.slane %v94_v41, %v281_v5 }
 0x1aa   :  { %v99_v44 = vmul.f32 %v98_v43, %v16_v42 }
 0x1ac   :  { %101 = vrot.lane.b32.xlu1 %v99_v44, %s259_s18 }
 0x21e   :  { %v102_v46 = vpop.permute.xlu1 %101 }
 0x21f   :  { %v104_v47 = vadd.f32 %v102_v46, %v99_v44 }
 0x221   :  { %v108_v48 = vadd.f32 %v106_v45, %v104_v47 }
 0x223   :  { %v197_v49 = vmul.f32 -1.442695, %v108_v48 }
 0x225   :  { %217 = vpow2.f32 %v197_v49 }
 0x232   :  { %v218_v50 = vpop.eup %217 }
 0x233   :  { %v112_v51 = vadd.f32 1.0, %v218_v50 }
 0x235   :  { %219 = vrcp.f32 %v112_v51 }
 0x242   :  { %v220_v52 = vpop.eup %219 }
 0x243   :  { %v115_v54 = vsub.f32 93.305, %v220_v52 }
 0x245   :  { %v116_v55 = vmul.f32 %v115_v54, %v17_v53 }
 0x247   :  { %v118_v57 = vrot.slane %v116_v55, 1 }
 0x249   :  { %v120_v58 = vadd.f32 %v118_v57, %v116_v55 }
 0x24b   :  { %v124_v59 = vadd.f32 %v122_v56, %v120_v58 }
 0x24d   :  { %v125_v60 = vmul.f32 3.0, %v124_v59 }
 0x24f   :  { %v126_v62 = vmax.f32 %v125_v60, 0.0 }
 0x251   :  { %v130_v63 = vrot.slane %v126_v62, %v281_v5 }
 0x253   :  { %v131_v1 = vmul.f32 %v130_v63, %v18_v61 }
 0x255   :  { %v135_v2 = vadd.f32 %v133_v0, %v131_v1 }
 0x257   :  { %v198_v3 = vmul.f32 -1.442695, %v135_v2 }
 0x259   :  { %221 = vpow2.f32 %v198_v3 }
 0x266   :  { %v222_v4 = vpop.eup %221 }
 0x267   :  { %v139_v7 = vadd.f32 1.0, %v222_v4 }
 0x269   :  { %223 = vrcp.f32 %v139_v7 }
 0x276   :  { %v224_v8 = vpop.eup %223 }
 0x277   :  { %v199_v9 = vadd.f32 -66.767, %v224_v8 }
 0x279   :  { %v143_v10 = vmul.f32 3.0, %v199_v9 }
 0x27b   :  { %225 = vtanh.f32 %v143_v10 }
 0x288   :  { %v226_v11 = vpop.eup %225 }
 0x289   :  { %v145_v12 = vmul.f32 29.523, %v226_v11 }
 0x28b   :  { %v146_v13 = vadd.f32 10.57, %v145_v12 }
 0x28d   :  { %149 = vperm.xlu0 %214, %v146_v13  }
 0x308   :  { %v150_v17 = vpop.permute.xlu0 %149 }
 0x309   :  { %v156_v18 = vmul.f32 %v155_v15, %v150_v17 }
 0x30b   :  { %v161_v19 = vadd.f32 %v160_v16, %v156_v18 }
 0x30d   :  { %v200_v20 = vmul.f32 -1.442695, %v161_v19 }
 0x30f   :  { %227 = vpow2.f32 %v200_v20 }
 0x31c   :  { %v228_v21 = vpop.eup %227 }
 0x31d   :  { %v165_v22 = vadd.f32 1.0, %v228_v21 }
 0x31f   :  { %229 = vrcp.f32 %v165_v22 }
 0x32c   :  { %v230_v23 = vpop.eup %229 }
 0x32d   :  { %v201_v24 = vadd.f32 -53.611, %v230_v23 }
 0x32f   :  { %v202_v25 = vmul.f32 -2.477, %v201_v24 }
 0x331   :  { %v171_v26 = vmul.f32 1.442695, %v202_v25 }
 0x333   :  { %231 = vpow2.f32 %v171_v26 }
 0x340   :  { %v232_v27 = vpop.eup %231 }
 0x341   :  { %v173_v28 = vadd.f32 1.0, %v232_v27 }
 0x343   :  { %233 = vrcp.f32 %v173_v28 }
 0x350   :  { %v234_v5 = vpop.eup %233 }
 0x351   :  { %177 = vst.msk [vmem:[#allocation2] sm:$0x1] %vm176_vm0, %v234_v5 }
 0x352   :  { %180 = vst.msk [vmem:[#allocation2] sm:$0x2] %vm179_vm1, %v234_v5 }
 0x353   :  { %246 = shalt.err (!%p243_p4)
}
 0x354   :  { %s261_s27 = smov 16   ;;  %s262_s28 = smov 1  }
 0x355   :  { %192 = dma.vmem_to_hbm [thread:$0]  %s187_s25, 32, %s319_s2, [#allocation3], %s261_s27, %s261_s27, %s262_s28  }
 0x356   :  { %255 = dma.done.wait [#allocation3], 32  }
 0x357   :  { %256 = vsyncadd [#allocation3], 4294967264 }
 0x358   :  { %196 = vsyncpa [#allocation3], 1 }

</bundles_post_ra>
